<compile_context>
chip_gen: v7x
topology: tpu7x:2x2x1
jax: 0.10.0
libtpu: 0.0.40
codegen_flags: <defaults>
</compile_context>

<pallas_src>
import jax
import jax.numpy as jnp
from jax.experimental import pallas as pl
from jax.experimental.pallas import tpu as pltpu

NUM_CLASSES = 3
POSITION_DIM = 132
WINDOW_SIZE = 6
INPUT_DIM = POSITION_DIM * WINDOW_SIZE  # 792
H1 = 64
H2 = 32

SUBLANE = 8
H_PAD = 128      # hidden dims padded to one lane tile (exact: ReLU(0)=0, zero bias pad)
OUT_PAD = 128    # last-layer weight padded to a full lane tile (MXU lane-dense)
MAX_TM = 2048    # batch tile (rows per grid step)


def _round_up(x, m):
    return (x + m - 1) // m * m


def _mlp_kernel(x_ref, w1_ref, b1_ref, w2_ref, b2_ref, w3_ref, b3_ref, o_ref):
    # Three MXU matmuls in bf16 with f32 accumulation; bias + ReLU on the VPU in f32.
    x = x_ref[...].astype(jnp.bfloat16)
    h1 = jnp.dot(x, w1_ref[...], preferred_element_type=jnp.float32) + b1_ref[...]
    h1 = jnp.maximum(h1, 0.0).astype(jnp.bfloat16)
    h2 = jnp.dot(h1, w2_ref[...], preferred_element_type=jnp.float32) + b2_ref[...]
    h2 = jnp.maximum(h2, 0.0).astype(jnp.bfloat16)
    out = jnp.dot(h2, w3_ref[...], preferred_element_type=jnp.float32) + b3_ref[...]
    # Narrow (tm, 3) store; only tm/8 masked vst per tile -> store slot nowhere near saturation.
    o_ref[...] = out[:, :NUM_CLASSES].astype(o_ref.dtype)


def prepare_padded_params(params):
    """Pad to lane-dense shapes and cast weights to bf16 ONCE at model-load time.

    Expects weights as (in, out) and biases as (out,). Padded columns/rows are
    zero, so results on the real lanes are exact (up to bf16 rounding).
    """
    w1, b1, w2, b2, w3, b3 = params
    w1p = jnp.zeros((INPUT_DIM, H_PAD), jnp.bfloat16).at[:, :H1].set(w1.astype(jnp.bfloat16))
    b1p = jnp.zeros((1, H_PAD), jnp.float32).at[:, :H1].set(b1.reshape(1, H1))
    w2p = jnp.zeros((H_PAD, H_PAD), jnp.bfloat16).at[:H1, :H2].set(w2.astype(jnp.bfloat16))
    b2p = jnp.zeros((1, H_PAD), jnp.float32).at[:, :H2].set(b2.reshape(1, H2))
    w3p = jnp.zeros((H_PAD, OUT_PAD), jnp.bfloat16).at[:H2, :NUM_CLASSES].set(w3.astype(jnp.bfloat16))
    b3p = jnp.zeros((1, OUT_PAD), jnp.float32).at[:, :NUM_CLASSES].set(b3.reshape(1, NUM_CLASSES))
    return w1p, b1p, w2p, b2p, w3p, b3p


@jax.jit
def mlp_baseline_forward(x, padded_params):
    """x: any shape whose trailing dims flatten to INPUT_DIM (mirrors x.view(-1, input_dim))."""
    w1p, b1p, w2p, b2p, w3p, b3p = padded_params

    x2d = x.reshape(-1, INPUT_DIM).astype(jnp.float32)
    batch = x2d.shape[0]

    # Only pad the batch when it is not sublane-aligned (<= 7 extra rows).
    # No feature-dim padding and no tile-multiple padding -> no extra HBM pass.
    batch_p = _round_up(batch, SUBLANE)
    if batch_p != batch:
        x2d = jnp.pad(x2d, ((0, batch_p - batch), (0, 0)))

    tm = min(MAX_TM, batch_p)
    grid = (pl.cdiv(batch_p, tm),)  # partial tail block handled by masked writeback

    def const_spec(shape):
        # Same block every grid step -> fetched once, stays VMEM-resident.
        return pl.BlockSpec(shape, lambda i: (0, 0))

    out = pl.pallas_call(
        _mlp_kernel,
        out_shape=jax.ShapeDtypeStruct((batch_p, NUM_CLASSES), jnp.float32),
        grid=grid,
        in_specs=[
            pl.BlockSpec((tm, INPUT_DIM), lambda i: (i, 0)),  # streamed input tiles (792 = full dim)
            const_spec((INPUT_DIM, H_PAD)),                   # w1 (bf16)
            const_spec((1, H_PAD)),                           # b1 (f32)
            const_spec((H_PAD, H_PAD)),                       # w2 (bf16)
            const_spec((1, H_PAD)),                           # b2 (f32)
            const_spec((H_PAD, OUT_PAD)),                     # w3 (bf16)
            const_spec((1, OUT_PAD)),                         # b3 (f32)
        ],
        out_specs=pl.BlockSpec((tm, NUM_CLASSES), lambda i: (i, 0)),
        compiler_params=pltpu.CompilerParams(
            dimension_semantics=("parallel",),                # shards batch over v7x's 2 TCs
            vmem_limit_bytes=48 * 1024 * 1024,
        ),
    )(x2d, w1p, b1p, w2p, b2p, w3p, b3p)

    return out[:batch]


def init_params(key):
    """Deterministic init mimicking torch Linear; weights stored (in, out), biases (out,)."""
    ks = jax.random.split(key, 6)

    def linear(kw, kb, fan_in, fan_out):
        bound = 1.0 / jnp.sqrt(fan_in)
        w = jax.random.uniform(kw, (fan_in, fan_out), jnp.float32, -bound, bound)
        b = jax.random.uniform(kb, (fan_out,), jnp.float32, -bound, bound)
        return w, b

    w1, b1 = linear(ks[0], ks[1], INPUT_DIM, H1)
    w2, b2 = linear(ks[2], ks[3], H1, H2)
    w3, b3 = linear(ks[4], ks[5], H2, NUM_CLASSES)
    return (w1, b1, w2, b2, w3, b3)


def _reference_forward(x, params):
    # Pure-JAX f32 reference (kernel uses bf16 MXU operands -> relaxed tolerance).
    w1, b1, w2, b2, w3, b3 = params
    x2d = x.reshape(-1, INPUT_DIM)
    h1 = jnp.maximum(x2d @ w1 + b1, 0.0)
    h2 = jnp.maximum(h1 @ w2 + b2, 0.0)
    return h2 @ w3 + b3


if __name__ == "__main__":
    key = jax.random.PRNGKey(0)
    k_params, k_x = jax.random.split(key)

    params = init_params(k_params)
    padded_params = prepare_padded_params(params)   # hoisted out of the per-call path

    # batch=2 samples, each a window of 6 frames x 132 position features
    # (flattened by the forward pass, matching x.view(-1, input_dim)).
    x = jax.random.normal(k_x, (2, WINDOW_SIZE, POSITION_DIM), jnp.float32)

    out = mlp_baseline_forward(x, padded_params)
    out = jax.block_until_ready(out)

    ref = _reference_forward(x, params)
    assert out.shape == (2, NUM_CLASSES), out.shape
    assert jnp.allclose(out, ref, atol=5e-2, rtol=5e-2), (
        "mismatch vs pure-JAX reference: max abs diff "
        f"{float(jnp.max(jnp.abs(out - ref)))}"
    )

    print("KERNEL_OK")
</pallas_src>

<mosaic_0001>
module attributes {stable_mosaic.version = 11 : i64} {
  func.func @_mlp_kernel(%arg0: i32, %arg1: memref<8x792xf32, #tpu.memory_space<vmem>>, %arg2: memref<792x128xbf16, #tpu.memory_space<vmem>>, %arg3: memref<1x128xf32, #tpu.memory_space<vmem>>, %arg4: memref<128x128xbf16, #tpu.memory_space<vmem>>, %arg5: memref<1x128xf32, #tpu.memory_space<vmem>>, %arg6: memref<128x128xbf16, #tpu.memory_space<vmem>>, %arg7: memref<1x128xf32, #tpu.memory_space<vmem>>, %arg8: memref<8x3xf32, #tpu.memory_space<vmem>>) attributes {dimension_semantics = [#tpu.dimension_semantics<parallel>], iteration_bounds = array<i64: 1>, scalar_prefetch = 0 : i64, scratch_operands = 0 : i64, tpu.core_type = #tpu.core_type<tc>, window_params = [{transform_indices = @transform_0, window_bounds = array<i64: 8, 792>}, {pipeline_mode = #tpu.pipeline_mode<synchronous>, transform_indices = @transform_1, window_bounds = array<i64: 792, 128>}, {pipeline_mode = #tpu.pipeline_mode<synchronous>, transform_indices = @transform_2, window_bounds = array<i64: 1, 128>}, {pipeline_mode = #tpu.pipeline_mode<synchronous>, transform_indices = @transform_3, window_bounds = array<i64: 128, 128>}, {pipeline_mode = #tpu.pipeline_mode<synchronous>, transform_indices = @transform_4, window_bounds = array<i64: 1, 128>}, {pipeline_mode = #tpu.pipeline_mode<synchronous>, transform_indices = @transform_5, window_bounds = array<i64: 128, 128>}, {pipeline_mode = #tpu.pipeline_mode<synchronous>, transform_indices = @transform_6, window_bounds = array<i64: 1, 128>}, {transform_indices = @transform_7, window_bounds = array<i64: 8, 3>}]} {
    %c0 = arith.constant 0 : index
    %c0_0 = arith.constant 0 : index
    %0 = vector.load %arg1[%c0, %c0_0] : memref<8x792xf32, #tpu.memory_space<vmem>>, vector<8x792xf32>
    %1 = arith.truncf %0 : vector<8x792xf32> to vector<8x792xbf16>
    %c0_1 = arith.constant 0 : index
    %c0_2 = arith.constant 0 : index
    %2 = vector.load %arg2[%c0_1, %c0_2] : memref<792x128xbf16, #tpu.memory_space<vmem>>, vector<792x128xbf16>
    %cst = arith.constant dense<0.000000e+00> : vector<8x128xf32>
    %3 = tpu.matmul %1, %2, %cst {dimension_numbers = #tpu.dot_dimension_numbers<[1], [0], [0], [1], [0, 0, 1, 1], [], []>} : vector<8x792xbf16>, vector<792x128xbf16>, vector<8x128xf32> -> vector<8x128xf32>
    %c0_3 = arith.constant 0 : index
    %c0_4 = arith.constant 0 : index
    %4 = vector.load %arg3[%c0_3, %c0_4] : memref<1x128xf32, #tpu.memory_space<vmem>>, vector<1x128xf32>
    %5 = vector.broadcast %4 : vector<1x128xf32> to vector<8x128xf32>
    %6 = arith.addf %3, %5 : vector<8x128xf32>
    %cst_5 = arith.constant 0.000000e+00 : f32
    %7 = vector.broadcast %cst_5 : f32 to vector<8x128xf32>
    %8 = arith.maximumf %6, %7 : vector<8x128xf32>
    %9 = arith.truncf %8 : vector<8x128xf32> to vector<8x128xbf16>
    %c0_6 = arith.constant 0 : index
    %c0_7 = arith.constant 0 : index
    %10 = vector.load %arg4[%c0_6, %c0_7] : memref<128x128xbf16, #tpu.memory_space<vmem>>, vector<128x128xbf16>
    %cst_8 = arith.constant dense<0.000000e+00> : vector<8x128xf32>
    %11 = tpu.matmul %9, %10, %cst_8 {dimension_numbers = #tpu.dot_dimension_numbers<[1], [0], [0], [1], [0, 0, 1, 1], [], []>} : vector<8x128xbf16>, vector<128x128xbf16>, vector<8x128xf32> -> vector<8x128xf32>
    %c0_9 = arith.constant 0 : index
    %c0_10 = arith.constant 0 : index
    %12 = vector.load %arg5[%c0_9, %c0_10] : memref<1x128xf32, #tpu.memory_space<vmem>>, vector<1x128xf32>
    %13 = vector.broadcast %12 : vector<1x128xf32> to vector<8x128xf32>
    %14 = arith.addf %11, %13 : vector<8x128xf32>
    %cst_11 = arith.constant 0.000000e+00 : f32
    %15 = vector.broadcast %cst_11 : f32 to vector<8x128xf32>
    %16 = arith.maximumf %14, %15 : vector<8x128xf32>
    %17 = arith.truncf %16 : vector<8x128xf32> to vector<8x128xbf16>
    %c0_12 = arith.constant 0 : index
    %c0_13 = arith.constant 0 : index
    %18 = vector.load %arg6[%c0_12, %c0_13] : memref<128x128xbf16, #tpu.memory_space<vmem>>, vector<128x128xbf16>
    %cst_14 = arith.constant dense<0.000000e+00> : vector<8x128xf32>
    %19 = tpu.matmul %17, %18, %cst_14 {dimension_numbers = #tpu.dot_dimension_numbers<[1], [0], [0], [1], [0, 0, 1, 1], [], []>} : vector<8x128xbf16>, vector<128x128xbf16>, vector<8x128xf32> -> vector<8x128xf32>
    %c0_15 = arith.constant 0 : index
    %c0_16 = arith.constant 0 : index
    %20 = vector.load %arg7[%c0_15, %c0_16] : memref<1x128xf32, #tpu.memory_space<vmem>>, vector<1x128xf32>
    %21 = vector.broadcast %20 : vector<1x128xf32> to vector<8x128xf32>
    %22 = arith.addf %19, %21 : vector<8x128xf32>
    %23 = vector.extract_strided_slice %22 {offsets = [0, 0], sizes = [8, 3], strides = [1, 1]} : vector<8x128xf32> to vector<8x3xf32>
    %c0_17 = arith.constant 0 : index
    %c0_18 = arith.constant 0 : index
    %24 = vector.load %arg8[%c0_17, %c0_18] : memref<8x3xf32, #tpu.memory_space<vmem>>, vector<8x3xf32>
    tpu.vector_store %arg8[%c0_17, %c0_18], %23 {strides = array<i32>} : memref<8x3xf32, #tpu.memory_space<vmem>>, vector<8x3xf32>,
    return
  }
  func.func @transform_0(%arg0: i32) -> (i32, i32) {
    %c0_i32 = arith.constant 0 : i32
    %c0_i32_0 = arith.constant 0 : i32
    return %arg0, %c0_i32 : i32, i32
  }
  func.func @transform_1(%arg0: i32) -> (i32, i32) {
    %c0_i32 = arith.constant 0 : i32
    %c0_i32_0 = arith.constant 0 : i32
    %c0_i32_1 = arith.constant 0 : i32
    return %c0_i32, %c0_i32_0 : i32, i32
  }
  func.func @transform_2(%arg0: i32) -> (i32, i32) {
    %c0_i32 = arith.constant 0 : i32
    %c0_i32_0 = arith.constant 0 : i32
    %c0_i32_1 = arith.constant 0 : i32
    return %c0_i32, %c0_i32_0 : i32, i32
  }
  func.func @transform_3(%arg0: i32) -> (i32, i32) {
    %c0_i32 = arith.constant 0 : i32
    %c0_i32_0 = arith.constant 0 : i32
    %c0_i32_1 = arith.constant 0 : i32
    return %c0_i32, %c0_i32_0 : i32, i32
  }
  func.func @transform_4(%arg0: i32) -> (i32, i32) {
    %c0_i32 = arith.constant 0 : i32
    %c0_i32_0 = arith.constant 0 : i32
    %c0_i32_1 = arith.constant 0 : i32
    return %c0_i32, %c0_i32_0 : i32, i32
  }
  func.func @transform_5(%arg0: i32) -> (i32, i32) {
    %c0_i32 = arith.constant 0 : i32
    %c0_i32_0 = arith.constant 0 : i32
    %c0_i32_1 = arith.constant 0 : i32
    return %c0_i32, %c0_i32_0 : i32, i32
  }
  func.func @transform_6(%arg0: i32) -> (i32, i32) {
    %c0_i32 = arith.constant 0 : i32
    %c0_i32_0 = arith.constant 0 : i32
    %c0_i32_1 = arith.constant 0 : i32
    return %c0_i32, %c0_i32_0 : i32, i32
  }
  func.func @transform_7(%arg0: i32) -> (i32, i32) {
    %c0_i32 = arith.constant 0 : i32
    %c0_i32_0 = arith.constant 0 : i32
    return %arg0, %c0_i32 : i32, i32
  }
}

</mosaic_0001>

<bundles_post_ra>
// kernel: mlp_baseline_forward.1
= control target key start
LH: loop header
LB: loop body
LE: loop exit
PB: predicated region body
PF: predicated region fallthrough
CT: control target
= control target key end

     0   :  { %12 = vsyncpa [#allocation3], 0  ;;  %s1159_s24 = smov [#allocation2]   ;;  %s1321_s0 = inlined_call_operand.vmem [shape: f32[8,792], index: 0, kind: input, shape index: {}]   ;;  %s1322_s1 = inlined_call_operand.hbm [shape: bf16[792,128], index: 1, kind: input, shape index: {}]   ;;  %s1323_s2 = inlined_call_operand.vmem [shape: f32[1,128], index: 2, kind: input, shape index: {}]   ;;  %s1324_s3 = inlined_call_operand.vmem [shape: bf16[128,128], index: 3, kind: input, shape index: {}]   ;;  %s1325_s4 = inlined_call_operand.vmem [shape: f32[1,128], index: 4, kind: input, shape index: {}]   ;;  %s1326_s5 = inlined_call_operand.vmem [shape: bf16[128,128], index: 5, kind: input, shape index: {}]   ;;  %s1327_s6 = inlined_call_operand.vmem [shape: f32[1,128], index: 6, kind: input, shape index: {}]   ;;  %s1328_s7 = inlined_call_operand.vmem [shape: f32[8,3], index: 7, kind: output, shape index: {}]  }
   0x1   :  { %s20_s25 = sshll.u32 %s1159_s24, 4  ;;  %s1135_s28 = scalar_lea.hbm %s1322_s1, 6336  ;;  %s21_s25 = int_to_ptr.vmem [resolvable:$true] %s20_s25 }
   0x2   :  { %p1136_p0 = scmp.ne.s32.totalorder %s1322_s1, %s1135_s28  ;;  %p1139_p1 = scmp.lt.u32.totalorder %s1135_s28, %s1322_s1 }
   0x4   :  { %p1141_p2 = pnand %p1139_p1, %p1136_p0 }
   0x6   :  { %1144 = shalt.err (!%p1141_p2)
}
   0x7   :  { %s1145_s10 = scalar_lea.vmem %s21_s25, 6336  ;;  %p1150_p4 = scmp.lt.s32.totalorder %s21_s25, %s21_s25 }
   0x8   :  { %p1146_p3 = scmp.ne.s32.totalorder %s21_s25, %s1145_s10  ;;  %p1151_p5 = scmp.lt.s32.totalorder %s1145_s10, %s1145_s10 }
   0xa   :  { %p1152_p6 = por %p1151_p5, %p1150_p4 }
   0xc   :  { %p1153_p7 = pnand %p1152_p6, %p1146_p3 }
   0xe   :  { %1156 = shalt.err (!%p1153_p7)
}
   0xf   :  { %s1160_s11 = smov 64   ;;  %s1161_s12 = smov 4  }
  0x10   :  { %26 = dma.hbm_to_vmem [thread:$0]  %s1322_s1, 6336, %s21_s25, [#allocation3], %s1160_s11, %s1160_s11, %s1161_s12  }
  0x11   :  { %1157 = dma.done.wait [#allocation3], 6336  }
  0x12   :  { %1158 = vsyncadd [#allocation3], 4294960960  ;;  %v1069_v0 = vld [vmem:[#allocation2 + $0x40] sm:$0xff]   ;;  %v1073_v4 = vld [vmem:[#allocation2 + $0x48] sm:$0xff]   ;;  %v1162_v44 = vmov 0.0   ;;  %vm1163_vm0 = vmmov 0  }
  0x13   :  { %v1070_v1 = vld [vmem:[#allocation2] sm:$0xff]   ;;  %929 = vmatprep.subr.bf16.mxu0 %v1069_v0  ;;  %v1074_v5 = vld [vmem:[#allocation2 + $0x8] sm:$0xff]   ;;  %v1077_v8 = vld [vmem:[#allocation2 + $0x50] sm:$0xff]   ;;  %vm462_vm1 = vcmask 1043456   ;;  %vm458_vm2 = vcmask 195584   ;;  %vm852_vm3 = vcmask 23552  }
  0x14   :  { %v1071_v2 = vld [vmem:[#allocation2 + $0xc0] sm:$0xff]   ;;  %930 = vmatpush3.bf16.msra.mxu0 %v1070_v1  ;;  %v1075_v6 = vld [vmem:[#allocation2 + $0xc8] sm:$0xff]   ;;  %v1078_v9 = vld [vmem:[#allocation2 + $0x10] sm:$0xff]  }
  0x15   :  { %v1072_v3 = vld [vmem:[#allocation2 + $0x80] sm:$0xff]   ;;  %951 = vmatprep.subr.bf16.mxu1 %v1071_v2  ;;  %931 = vmatprep.subr.bf16.mxu0 %v1073_v4  ;;  %v1076_v7 = vld [vmem:[#allocation2 + $0x88] sm:$0xff]   ;;  %v1079_v10 = vld [vmem:[#allocation2 + $0xd0] sm:$0xff]  }
  0x16   :  { %952 = vmatpush3.bf16.msra.mxu1 %v1072_v3  ;;  %v1080_v11 = vld [vmem:[#allocation2 + $0x90] sm:$0xff]   ;;  %v1081_v12 = vld [vmem:[#allocation2 + $0x58] sm:$0xff]   ;;  %v1085_v16 = vld [vmem:[#allocation2 + $0x60] sm:$0xff]  }
  0x17   :  { %953 = vmatprep.subr.bf16.mxu1 %v1075_v6  ;;  %v1082_v13 = vld [vmem:[#allocation2 + $0x18] sm:$0xff]   ;;  %v1086_v17 = vld [vmem:[#allocation2 + $0x20] sm:$0xff]   ;;  %v1089_v20 = vld [vmem:[#allocation2 + $0x68] sm:$0xff]  }
  0x18   :  { %932 = vmatpush3.bf16.msra.mxu0 %v1074_v5  ;;  %v1083_v14 = vld [vmem:[#allocation2 + $0xd8] sm:$0xff]   ;;  %v1087_v18 = vld [vmem:[#allocation2 + $0xe0] sm:$0xff]   ;;  %v1090_v21 = vld [vmem:[#allocation2 + $0x28] sm:$0xff]  }
  0x19   :  { %933 = vmatprep.subr.bf16.mxu0 %v1077_v8  ;;  %v1084_v15 = vld [vmem:[#allocation2 + $0x98] sm:$0xff]   ;;  %v1088_v19 = vld [vmem:[#allocation2 + $0xa0] sm:$0xff]   ;;  %v1091_v22 = vld [vmem:[#allocation2 + $0xe8] sm:$0xff]  }
  0x1a   :  { %954 = vmatpush3.bf16.msra.mxu1 %v1076_v7  ;;  %v1092_v23 = vld [vmem:[#allocation2 + $0xa8] sm:$0xff]   ;;  %v1093_v24 = vld [vmem:[#allocation2 + $0x70] sm:$0xff]   ;;  %v1097_v28 = vld [vmem:[#allocation2 + $0x78] sm:$0xff]  }
  0x1b   :  { %955 = vmatprep.subr.bf16.mxu1 %v1079_v10  ;;  %v1094_v25 = vld [vmem:[#allocation2 + $0x30] sm:$0xff]   ;;  %v1098_v29 = vld [vmem:[#allocation2 + $0x38] sm:$0xff]   ;;  %v42_v31 = vld [vmem:[%s1321_s0 + $0x8] sm:$0xff] }
  0x1c   :  { %934 = vmatpush3.bf16.msra.mxu0 %v1078_v9  ;;  %v1095_v26 = vld [vmem:[#allocation2 + $0xf0] sm:$0xff]   ;;  %v1099_v30 = vld [vmem:[#allocation2 + $0xf8] sm:$0xff]   ;;  %v49_v32 = vpack.c.bf16 %v42_v31, %v42_v31  ;;  %v41_v34 = vld [vmem:[%s1321_s0] sm:$0xff] }
  0x1d   :  { %935 = vmatprep.subr.bf16.mxu0 %v1081_v12  ;;  %v1096_v27 = vld [vmem:[#allocation2 + $0xb0] sm:$0xff]   ;;  %v1100_v33 = vld [vmem:[#allocation2 + $0xb8] sm:$0xff]   ;;  %v48_v35 = vpack.c.bf16 %v41_v34, %v41_v34  ;;  %v1101_v36 = vld [vmem:[#allocation2 + $0x140] sm:$0xff]  }
  0x1e   :  { %956 = vmatpush3.bf16.msra.mxu1 %v1080_v11  ;;  %v44_v37 = vld [vmem:[%s1321_s0 + $0x18] sm:$0xff]  ;;  %498 = vmatprep.mubr.bf16.mxu0 %v49_v32  ;;  %v1102_v39 = vld [vmem:[#allocation2 + $0x100] sm:$0xff]   ;;  %v43_v40 = vld [vmem:[%s1321_s0 + $0x10] sm:$0xff] }
  0x1f   :  { %957 = vmatprep.subr.bf16.mxu1 %v1083_v14  ;;  %v51_v38 = vpack.c.bf16 %v44_v37, %v44_v37  ;;  %v50_v41 = vpack.c.bf16 %v43_v40, %v43_v40  ;;  %v1103_v42 = vld [vmem:[#allocation2 + $0x148] sm:$0xff]   ;;  %v1105_v45 = vld [vmem:[#allocation2 + $0x150] sm:$0xff]   ;;  %v1107_v47 = vld [vmem:[#allocation2 + $0x158] sm:$0xff]  }
  0x20   :  { %936 = vmatpush3.bf16.msra.mxu0 %v1082_v13  ;;  %v1104_v43 = vld [vmem:[#allocation2 + $0x108] sm:$0xff]   ;;  %v1106_v46 = vld [vmem:[#allocation2 + $0x110] sm:$0xff]   ;;  %v1108_v48 = vld [vmem:[#allocation2 + $0x118] sm:$0xff]  }
  0x21   :  { %937 = vmatprep.subr.bf16.mxu0 %v1085_v16  ;;  %538 = vmatprep.mubr.bf16.mxu1 %v51_v38  ;;  %v1109_v49 = vld [vmem:[#allocation2 + $0x160] sm:$0xff]   ;;  %v1111_v52 = vld [vmem:[#allocation2 + $0x168] sm:$0xff]   ;;  %v47_v57 = vld [vmem:[%s1321_s0 + $0x30] sm:$0xff] }
  0x22   :  { %958 = vmatpush3.bf16.msra.mxu1 %v1084_v15  ;;  %v1110_v50 = vld [vmem:[#allocation2 + $0x120] sm:$0xff]   ;;  %v46_v53 = vld [vmem:[%s1321_s0 + $0x28] sm:$0xff]  ;;  %v1113_v58 = vld [vmem:[#allocation2 + $0x170] sm:$0xff]   ;;  %v54_v60 = vpack.c.bf16 %v47_v57, %v47_v57 }
  0x23   :  { %959 = vmatprep.subr.bf16.mxu1 %v1087_v18  ;;  %v1115_v51 = vld [vmem:[#allocation2 + $0x180] sm:$0xff]   ;;  %v1112_v54 = vld [vmem:[#allocation2 + $0x128] sm:$0xff]   ;;  %v53_v55 = vpack.c.bf16 %v46_v53, %v46_v53  ;;  %v1114_v61 = vld [vmem:[#allocation2 + $0x130] sm:$0xff]  }
  0x24   :  { %938 = vmatpush3.bf16.msra.mxu0 %v1086_v17  ;;  %v1118_v56 = vld [vmem:[#allocation2 + $0x188] ss:$0 sps:$4 sm:$0xff]   ;;  %v1116_v62 = vld [vmem:[#allocation2 + $0x178] sm:$0xff]   ;;  %v45_v0 = vld [vmem:[%s1321_s0 + $0x20] sm:$0xff] }
  0x25   :  { %939 = vmatprep.subr.bf16.mxu0 %v1089_v20  ;;  %v464_v59 = vsel %vm462_vm1, %v1118_v56, 0  ;;  %v1117_v63 = vld [vmem:[#allocation2 + $0x138] sm:$0xff]   ;;  %v52_v1 = vpack.c.bf16 %v45_v0, %v45_v0  ;;  %v1119_v2 = vld [vmem:[%s1324_s3] sm:$0xff]   ;;  %v1120_v3 = vld [vmem:[%s1324_s3 + $0x8] sm:$0xff]  }
  0x26   :  { %960 = vmatpush3.bf16.msra.mxu1 %v1088_v19  ;;  %v1121_v4 = vld [vmem:[%s1324_s3 + $0x10] sm:$0xff]   ;;  %v1122_v5 = vld [vmem:[%s1324_s3 + $0x18] sm:$0xff]   ;;  %v1123_v6 = vld [vmem:[%s1324_s3 + $0x20] sm:$0xff]  }
  0x27   :  { %961 = vmatprep.subr.bf16.mxu1 %v1091_v22  ;;  %v1124_v7 = vld [vmem:[%s1324_s3 + $0x28] sm:$0xff]   ;;  %v1125_v8 = vld [vmem:[%s1324_s3 + $0x30] sm:$0xff]   ;;  %v1126_v9 = vld [vmem:[%s1324_s3 + $0x38] sm:$0xff]  }
  0x28   :  { %940 = vmatpush3.bf16.msra.mxu0 %v1090_v21  ;;  %v1127_v10 = vld [vmem:[%s1326_s5] sm:$0xff]   ;;  %v1128_v11 = vld [vmem:[%s1326_s5 + $0x8] sm:$0xff]   ;;  %v1129_v12 = vld [vmem:[%s1326_s5 + $0x10] sm:$0xff]  }
  0x29   :  { %941 = vmatprep.subr.bf16.mxu0 %v1093_v24  ;;  %v1130_v13 = vld [vmem:[%s1326_s5 + $0x18] sm:$0xff]   ;;  %v1131_v14 = vld [vmem:[%s1326_s5 + $0x20] sm:$0xff]   ;;  %v1132_v15 = vld [vmem:[%s1326_s5 + $0x28] sm:$0xff]  }
  0x2a   :  { %962 = vmatpush3.bf16.msra.mxu1 %v1092_v23  ;;  %v859_v17 = vld [vmem:[%s1323_s2] ss:$0 sm:$0xff] }
  0x2b   :  { %963 = vmatprep.subr.bf16.mxu1 %v1095_v26 }
  0x2c   :  { %942 = vmatpush3.bf16.msra.mxu0 %v1094_v25 }
  0x2d   :  { %943 = vmatprep.subr.bf16.mxu0 %v1097_v28 }
  0x2e   :  { %964 = vmatpush3.bf16.msra.mxu1 %v1096_v27 }
  0x2f   :  { %965 = vmatprep.subr.bf16.mxu1 %v1099_v30 }
  0x30   :  { %944 = vmatpush3.bf16.msra.mxu0 %v1098_v29 }
  0x31   :  { %973 = vmatprep.subr.bf16.mxu0 %v1101_v36 }
  0x32   :  { %966 = vmatpush3.bf16.msra.mxu1 %v1100_v33 }
  0x33   :  { %499 = vmatmul.mubr.bf16.vlgmr.msra.gmra.mrb[0].mxu0 %v48_v35  ;;  %1016 = vmatprep.subr.bf16.mxu1 %v1162_v44 }
  0x34   :  { %974 = vmatpush3.bf16.msra.mxu0 %v1102_v39  ;;  %578 = vmatprep.mubr.bf16.mxu0 %v53_v55 }
  0x35   :  { %539 = vmatmul.mubr.bf16.vlgmr.msra.gmra.mrb[0].mxu1 %v50_v41  ;;  %975 = vmatprep.subr.bf16.mxu0 %v1103_v42  ;;  %v1133_v42 = vld [vmem:[%s1326_s5 + $0x30] sm:$0xff]  }
  0x36   :  { %1020 = vmatprep.mubr.msk.bf16.mxu1 %vm1163_vm0, %v1162_v44  ;;  %1017 = vmatpush3.bf16.msra.mxu1 %v1115_v51 }
  0x37   :  { %1018 = vmatprep.subr.bf16.mxu1 %v1162_v44 }
  0x38   :  { %976 = vmatpush3.bf16.msra.mxu0 %v1104_v43  ;;  %v1134_v43 = vld [vmem:[%s1326_s5 + $0x38] sm:$0xff]  }
  0x39   :  { %977 = vmatprep.subr.bf16.mxu0 %v1105_v45  ;;  %v911_v45 = vld [vmem:[%s1325_s4] ss:$0 sm:$0xff] }
  0x3a   :  { %1019 = vmatpush3.bf16.msra.mxu1 %v464_v59 }
  0x3b   :  { %1024 = vmatprep.subr.bf16.mxu1 %v1162_v44 }
  0x3c   :  { %978 = vmatpush3.bf16.msra.mxu0 %v1106_v46 }
  0x3d   :  { %979 = vmatprep.subr.bf16.mxu0 %v1107_v47  ;;  %1021 = vmatmul.mubr.msk.bf16.vlgmr.msra.gmra.mrb[4].mxu1 %vm458_vm2, %v54_v60 }
  0x3e   :  { %1040 = vmatprep.mubr.msk.bf16.mxu1 %vm1163_vm0, %v1162_v44  ;;  %1025 = vmatpush3.bf16.msra.mxu1 %v1119_v2 }
  0x3f   :  { %1026 = vmatprep.subr.bf16.mxu1 %v1162_v44 }
  0x40   :  { %980 = vmatpush3.bf16.msra.mxu0 %v1108_v48 }
  0x41   :  { %981 = vmatprep.subr.bf16.mxu0 %v1109_v49 }
  0x42   :  { %1027 = vmatpush3.bf16.msra.mxu1 %v1120_v3 }
  0x43   :  { %1028 = vmatprep.subr.bf16.mxu1 %v1162_v44 }
  0x44   :  { %982 = vmatpush3.bf16.msra.mxu0 %v1110_v50 }
  0x45   :  { %983 = vmatprep.subr.bf16.mxu0 %v1111_v52 }
  0x46   :  { %1029 = vmatpush3.bf16.msra.mxu1 %v1121_v4 }
  0x47   :  { %1030 = vmatprep.subr.bf16.mxu1 %v1162_v44 }
  0x48   :  { %984 = vmatpush3.bf16.msra.mxu0 %v1112_v54 }
  0x49   :  { %985 = vmatprep.subr.bf16.mxu0 %v1113_v58 }
  0x4a   :  { %1031 = vmatpush3.bf16.msra.mxu1 %v1122_v5 }
  0x4b   :  { %1032 = vmatprep.subr.bf16.mxu1 %v1162_v44 }
  0x4c   :  { %986 = vmatpush3.bf16.msra.mxu0 %v1114_v61 }
  0x4d   :  { %987 = vmatprep.subr.bf16.mxu0 %v1116_v62 }
  0x4e   :  { %1033 = vmatpush3.bf16.msra.mxu1 %v1123_v6 }
  0x4f   :  { %1034 = vmatprep.subr.bf16.mxu1 %v1162_v44 }
  0x50   :  { %988 = vmatpush3.bf16.msra.mxu0 %v1117_v63 }
  0x51   :  { %1044 = vmatprep.subr.bf16.mxu0 %v1162_v44 }
  0x52   :  { %1035 = vmatpush3.bf16.msra.mxu1 %v1124_v7 }
  0x53   :  { %579 = vmatmul.mubr.bf16.vlgmr.msra.gmra.mrb[4].mxu0 %v52_v1  ;;  %1036 = vmatprep.subr.bf16.mxu1 %v1162_v44 }
  0x54   :  { %1060 = vmatprep.mubr.msk.bf16.mxu0 %vm1163_vm0, %v1162_v44  ;;  %1045 = vmatpush3.bf16.msra.mxu0 %v1127_v10 }
  0x55   :  { %1046 = vmatprep.subr.bf16.mxu0 %v1162_v44 }
  0x56   :  { %1037 = vmatpush3.bf16.msra.mxu1 %v1125_v8 }
  0x57   :  { %1038 = vmatprep.subr.bf16.mxu1 %v1162_v44 }
  0x58   :  { %1047 = vmatpush3.bf16.msra.mxu0 %v1128_v11 }
  0x59   :  { %1048 = vmatprep.subr.bf16.mxu0 %v1162_v44 }
  0x5a   :  { %1039 = vmatpush3.bf16.msra.mxu1 %v1126_v9 }
  0x5c   :  { %1049 = vmatpush3.bf16.msra.mxu0 %v1129_v12 }
  0x5d   :  { %1050 = vmatprep.subr.bf16.mxu0 %v1162_v44 }
  0x60   :  { %1051 = vmatpush3.bf16.msra.mxu0 %v1130_v13 }
  0x61   :  { %1052 = vmatprep.subr.bf16.mxu0 %v1162_v44 }
  0x64   :  { %1053 = vmatpush3.bf16.msra.mxu0 %v1131_v14 }
  0x65   :  { %1054 = vmatprep.subr.bf16.mxu0 %v1162_v44 }
  0x68   :  { %1055 = vmatpush3.bf16.msra.mxu0 %v1132_v15 }
  0x69   :  { %1056 = vmatprep.subr.bf16.mxu0 %v1162_v44 }
  0x6c   :  { %1057 = vmatpush3.bf16.msra.mxu0 %v1133_v42 }
  0x6d   :  { %1058 = vmatprep.subr.bf16.mxu0 %v1162_v44  ;;  %v920_v44 = vld [vmem:[%s1327_s6] ss:$0 sm:$0xff] }
  0x70   :  { %1059 = vmatpush3.bf16.msra.mxu0 %v1134_v43 }
 0x106   :  { %v945_v16 = vpop.f32.mrb[0].mxu0 }
 0x107   :  { %v946_v18 = vpop.f32.mrb[1].mxu0 }
 0x108   :  { %v947_v19 = vadd.f32 %v946_v18, %v945_v16  ;;  %v948_v20 = vpop.f32.mrb[2].mxu0  ;;  %v967_v21 = vpop.f32.mrb[0].mxu1 }
 0x109   :  { %v949_v22 = vpop.f32.mrb[3].mxu0  ;;  %v968_v24 = vpop.f32.mrb[1].mxu1 }
 0x10a   :  { %v501_v23 = vadd.f32 %v947_v19, %v859_v17  ;;  %v969_v25 = vadd.f32 %v968_v24, %v967_v21  ;;  %v970_v26 = vpop.f32.mrb[2].mxu1 }
 0x10b   :  { %v971_v27 = vpop.f32.mrb[3].mxu1 }
 0x10c   :  { %v541_v28 = vadd.f32 %v969_v25, %v501_v23 }
 0x110   :  { %v620_v29 = vpop.f32.mrb[4].mxu1 }
 0x111   :  { %v1022_v30 = vpop.f32.mrb[5].mxu1 }
 0x112   :  { %v623_v31 = vpop.f32.mrb[6].mxu1 }
 0x113   :  { %v1023_v32 = vpop.f32.mrb[7].mxu1 }
 0x126   :  { %v989_v33 = vpop.f32.mrb[4].mxu0 }
 0x127   :  { %v990_v34 = vpop.f32.mrb[5].mxu0 }
 0x128   :  { %v991_v35 = vadd.f32 %v990_v34, %v989_v33  ;;  %v992_v36 = vpop.f32.mrb[6].mxu0 }
 0x129   :  { %v993_v37 = vpop.f32.mrb[7].mxu0 }
 0x12a   :  { %v581_v38 = vadd.f32 %v991_v35, %v541_v28 }
 0x12c   :  { %v621_v39 = vadd.f32 %v620_v29, %v581_v38 }
 0x12e   :  { %v626_v40 = vmax.f32 %v621_v39, 0.0 }
 0x130   :  { %v627_v41 = vpack.c.bf16 %v626_v40, %v626_v40 }
 0x132   :  { %1041 = vmatmul.mubr.bf16.vlgmr.msra.gmra.mrb[8].mxu1 %v627_v41 }
 0x205   :  { %v733_v46 = vpop.f32.mrb[8].mxu1 }
 0x206   :  { %v734_v47 = vadd.f32 %v911_v45, %v733_v46  ;;  %v1042_v48 = vpop.f32.mrb[9].mxu1 }
 0x207   :  { %v736_v49 = vpop.f32.mrb[10].mxu1 }
 0x208   :  { %v739_v50 = vmax.f32 %v734_v47, 0.0  ;;  %v1043_v51 = vpop.f32.mrb[11].mxu1 }
 0x20a   :  { %v740_v52 = vpack.c.bf16 %v739_v50, %v739_v50 }
 0x20c   :  { %1061 = vmatmul.mubr.bf16.vlgmr.msra.gmra.mrb[8].mxu0 %v740_v52 }
 0x2df   :  { %v846_v53 = vpop.f32.mrb[8].mxu0 }
 0x2e0   :  { %v847_v54 = vadd.f32 %v920_v44, %v846_v53  ;;  %v1062_v55 = vpop.f32.mrb[9].mxu0 }
 0x2e1   :  { %v849_v56 = vpop.f32.mrb[10].mxu0 }
 0x2e2   :  { %853 = vst.msk [vmem:[%s1328_s7] sm:$0xff] %vm852_vm3, %v847_v54  ;;  %v1063_v57 = vpop.f32.mrb[11].mxu0 }
 0x2e3   :  { %858 = vsyncpa [#allocation3], 1 }

</bundles_post_ra>
